<compile_context>
chip_gen: v6e
topology: v6e:2x2x1
jax: 0.10.0
libtpu: 0.0.40
codegen_flags: <defaults>
</compile_context>

<pallas_src>
import jax
import jax.numpy as jnp
from jax.experimental import pallas as pl
from jax.experimental.pallas import tpu as pltpu


def autopad(k, p=None):
    if p is None:
        p = k // 2 if isinstance(k, int) else [x // 2 for x in k]
    return p


def _round_up(x, m):
    return ((x + m - 1) // m) * m


# ----------------------------- Pallas kernel ---------------------------------
def _classify_kernel(x_ref, w_ref, b_ref, o_ref, acc_ref):
    # x_ref:   (tn, tc1, HW)  activation block (input dtype), HW on the lane axis
    # w_ref:   (tc1, C2p)     f32 weight chunk (1x1 conv == linear), 1/HW pre-folded
    # b_ref:   (1, C2p)       f32 bias row
    # o_ref:   (tn, C2p)      f32 output block (written once, at the last C1 step)
    # acc_ref: (tn, C2p)      f32 VMEM accumulator (persists across the C1 axis)
    j = pl.program_id(1)

    @pl.when(j == 0)
    def _():
        acc_ref[...] = jnp.zeros_like(acc_ref)

    # Partial global-average-pool: f32-accumulated sum over the spatial axis.
    # The 1/HW scale is folded into the weight by the wrapper (no divide here, and no
    # explicit f32 copy of the whole block).
    # TODO(synk): an NHWC-layout producer would put this reduce on the sublane/VPU path
    # instead of the lane/XLU path; transposing NCHW here would cost an extra HBM pass,
    # so we keep the lane reduce (it hides under the activation DMA).
    pooled = jnp.sum(x_ref[...], axis=-1, dtype=jnp.float32)          # (tn, tc1)

    # f32 MXU matmul (kernel is memory-bound -> full precision is essentially free).
    acc_ref[...] += jnp.dot(pooled, w_ref[...], preferred_element_type=jnp.float32)

    @pl.when(j == pl.num_programs(1) - 1)
    def _():
        o_ref[...] = (acc_ref[...] + b_ref[...]).astype(o_ref.dtype)


# ------------------------------ VMEM planning ---------------------------------
def _vmem_budget_and_limit():
    """Generation-aware VMEM sizing (v5e/v6e: 128 MiB, v7x: 64 MiB per TensorCore)."""
    cap = 64 * 1024 * 1024  # conservative fallback (v7x-sized)
    try:
        info = pltpu.get_tpu_info()
        c = int(getattr(info, "vmem_capacity_bytes", 0) or 0)
        if c > 0:
            cap = c
    except Exception:
        pass
    budget = int(0.35 * cap)   # planning budget for our buffers
    limit = int(0.65 * cap)    # Mosaic scoped-VMEM limit (leave headroom)
    return budget, limit


def _plan_tiles(n, c1, hw, c2p, itemsize, budget):
    """Pick (tn, tc1): batch tile and C1 (reduction) chunk size.

    Accounts for lane padding (HW -> multiple of 128), dtype-dependent sublane padding,
    double-buffered activation/weight/output blocks, bias and the f32 accumulator.
    """
    hw_pad = _round_up(hw, 128)
    n_cap = min(1024, _round_up(n, 8))
    sub = max(8, 32 // max(itemsize, 1))       # sublane granularity for the activation dtype

    def max_tn(tc1):
        per_row = (2 * _round_up(tc1, sub) * hw_pad * itemsize   # 2x-buffered input block
                   + 2 * c2p * 4                                  # 2x-buffered f32 output
                   + c2p * 4)                                     # f32 accumulator
        fixed = (2 * _round_up(tc1, 8) * c2p * 4                  # 2x-buffered f32 weight
                 + 2 * 8 * c2p * 4)                               # bias row (padded sublanes)
        avail = budget - fixed
        if avail < 8 * per_row:
            return 0
        return min(n_cap, (avail // per_row // 8) * 8)

    # C1 chunk candidates: the full C1 first, then proper divisors that are multiples of 8.
    c1_proper = sorted([d for d in range(8, c1, 8) if c1 % d == 0], reverse=True)
    tn, tc1 = 8, (c1_proper[-1] if c1_proper else c1)     # fallback if nothing fits budget
    for cand in [c1] + c1_proper:
        t = max_tn(cand)
        if t >= 8:
            tn, tc1 = t, cand
            break

    # Balance the batch tiling and keep >=2 batch tiles when there is enough work
    # (megacore sharding on v7x, and DMA/compute overlap).
    nt = pl.cdiv(n, tn)
    if n >= 16 and nt == 1:
        nt = 2
    tn = min(tn, max(8, _round_up(pl.cdiv(n, nt), 8)))

    # If the grid would be a single step, split the C1 reduction axis so the pipeline has
    # >=2 (ideally >=4) steps to overlap the activation DMA with compute.
    if pl.cdiv(n, tn) == 1 and (c1 // tc1) == 1:
        for want in (4, 2):
            opts = [d for d in c1_proper if c1 // d >= want]
            if opts:
                tc1 = opts[0]
                break

    return tn, tc1


# --------------------------- fused pool + linear -------------------------------
def _pooled_linear(x_nchw, w_f32, bias_row, c2p, budget, vmem_limit):
    """Fused global-avg-pool + (pooled @ W + b) for one feature map -> [N, C2p] f32."""
    N, C1, H, W = x_nchw.shape
    HW = H * W
    itemsize = jnp.dtype(x_nchw.dtype).itemsize
    tn, tc1 = _plan_tiles(N, C1, HW, c2p, itemsize, budget)
    n_pad = _round_up(N, tn)

    x3 = x_nchw.reshape(N, C1, HW)
    if n_pad != N:
        x3 = jnp.pad(x3, ((0, n_pad - N), (0, 0), (0, 0)))

    grid = (n_pad // tn, C1 // tc1)
    out = pl.pallas_call(
        _classify_kernel,
        out_shape=jax.ShapeDtypeStruct((n_pad, c2p), jnp.float32),
        grid_spec=pltpu.PrefetchScalarGridSpec(
            num_scalar_prefetch=0,
            grid=grid,
            in_specs=[
                pl.BlockSpec((tn, tc1, HW), lambda i, j: (i, j, 0)),
                pl.BlockSpec((tc1, c2p), lambda i, j: (j, 0)),
                pl.BlockSpec((1, c2p), lambda i, j: (0, 0)),
            ],
            out_specs=pl.BlockSpec((tn, c2p), lambda i, j: (i, 0)),
            scratch_shapes=[pltpu.VMEM((tn, c2p), jnp.float32)],
        ),
        compiler_params=pltpu.CompilerParams(
            dimension_semantics=("parallel", "arbitrary"),
            vmem_limit_bytes=vmem_limit,
        ),
    )(x3, w_f32, bias_row)
    return out[:N]


# ------------------------------- module wrapper --------------------------------
def classify_forward(x, weight, bias, k=1, s=1, p=None):
    """YOLOv5 Classify forward: flatten(conv(adaptive_avg_pool(x))).

    x:      [N, C1, H, W] array, or a list of such arrays (channel-concat after pooling).
    weight: [C2, C1_total, k, k] PyTorch Conv2d weight (groups=1).
    bias:   [C2]
    returns [N, C2]
    """
    p = autopad(k, p)
    xs = list(x) if isinstance(x, (list, tuple)) else [x]
    C2 = weight.shape[0]

    # Pooled map is 1x1: conv output must stay 1x1 and only the tap over the pooled pixel
    # contributes.  Holds for the module defaults (k=1) and any odd k with p=k//2, s>=1.
    # TODO(synk): general even-k / custom-padding case would produce a >1x1 spatial output.
    assert (1 + 2 * p - k) // s + 1 == 1 and p < k, "unsupported (k, s, p) for 1x1 pooled map"
    w2d = weight[:, :, p, p]                                     # [C2, C1_total]

    C2p = _round_up(C2, 128)                                     # lane-dense output channels
    bias_row = jnp.zeros((1, C2p), jnp.float32).at[0, :C2].set(bias.astype(jnp.float32))
    zero_row = jnp.zeros((1, C2p), jnp.float32)

    budget, vmem_limit = _vmem_budget_and_limit()

    N = xs[0].shape[0]
    out_dtype = xs[0].dtype
    acc = None
    off = 0
    for idx, xi in enumerate(xs):
        C1_i = xi.shape[1]
        HW_i = xi.shape[2] * xi.shape[3]
        # f32 weight slice, transposed to (C1_i, C2p), with the 1/HW pooling scale folded in.
        w_i = jnp.zeros((C1_i, C2p), jnp.float32).at[:, :C2].set(
            jnp.transpose(w2d[:, off:off + C1_i], (1, 0)).astype(jnp.float32) / float(HW_i)
        )
        b_i = bias_row if idx == 0 else zero_row
        part = _pooled_linear(xi, w_i, b_i, C2p, budget, vmem_limit)  # [N, C2p] f32
        acc = part if acc is None else acc + part
        off += C1_i
    assert off == weight.shape[1], "channel count mismatch between inputs and weight"

    return acc[:, :C2].astype(out_dtype)                         # Flatten -> [N, C2]


# ------------------------------- reference -----------------------------------
def _reference(x, weight, bias, k=1, s=1, p=None):
    p = autopad(k, p)
    xs = list(x) if isinstance(x, (list, tuple)) else [x]
    z = jnp.concatenate([jnp.mean(y, axis=(2, 3), keepdims=True) for y in xs], axis=1)
    y = jax.lax.conv_general_dilated(
        z, weight, window_strides=(s, s), padding=[(p, p), (p, p)],
        dimension_numbers=("NCHW", "OIHW", "NCHW"),
        precision=jax.lax.Precision.HIGHEST)
    y = y + bias[None, :, None, None]
    return y.reshape(y.shape[0], -1)


# --------------------------------- main ---------------------------------------
if __name__ == "__main__":
    key = jax.random.PRNGKey(0)
    kx, kw, kb = jax.random.split(key, 3)

    N, C1, H, W = 2, 4, 16, 16
    C2, k, s = 10, 1, 1                                           # module defaults: k=1, s=1

    x = jax.random.normal(kx, (N, C1, H, W), dtype=jnp.float32)
    weight = jax.random.normal(kw, (C2, C1, k, k), dtype=jnp.float32) * 0.1
    bias = 0.1 * jax.random.normal(kb, (C2,), dtype=jnp.float32)

    out = classify_forward(x, weight, bias, k=k, s=s)
    out = jax.block_until_ready(out)

    ref = _reference(x, weight, bias, k=k, s=s)
    assert out.shape == (N, C2), out.shape
    max_err = float(jnp.max(jnp.abs(out - ref)))
    assert jnp.allclose(out, ref, atol=1e-3, rtol=1e-3), max_err

    print("KERNEL_OK")
</pallas_src>

<mosaic_0001>
module attributes {stable_mosaic.version = 11 : i64} {
  func.func @_classify_kernel(%arg0: i32, %arg1: i32, %arg2: memref<8x4x256xf32, #tpu.memory_space<vmem>>, %arg3: memref<4x128xf32, #tpu.memory_space<vmem>>, %arg4: memref<1x128xf32, #tpu.memory_space<vmem>>, %arg5: memref<8x128xf32, #tpu.memory_space<vmem>>, %arg6: memref<8x128xf32, #tpu.memory_space<vmem>>) attributes {dimension_semantics = [#tpu.dimension_semantics<parallel>, #tpu.dimension_semantics<arbitrary>], iteration_bounds = array<i64: 1, 1>, scalar_prefetch = 0 : i64, scratch_operands = 1 : i64, tpu.core_type = #tpu.core_type<tc>, window_params = [{transform_indices = @transform_0, window_bounds = array<i64: 8, 4, 256>}, {transform_indices = @transform_1, window_bounds = array<i64: 4, 128>}, {pipeline_mode = #tpu.pipeline_mode<synchronous>, transform_indices = @transform_2, window_bounds = array<i64: 1, 128>}, {transform_indices = @transform_3, window_bounds = array<i64: 8, 128>}]} {
    %c0_i32 = arith.constant 0 : i32
    %0 = arith.cmpi eq, %arg1, %c0_i32 : i32
    %1 = arith.extui %0 : i1 to i32
    %c0_i32_0 = arith.constant 0 : i32
    %2 = arith.cmpi ne, %1, %c0_i32_0 : i32
    scf.if %2 {
      %cst_12 = arith.constant 0.000000e+00 : f32
      %13 = vector.broadcast %cst_12 : f32 to vector<8x128xf32>
      %c0_13 = arith.constant 0 : index
      %c0_14 = arith.constant 0 : index
      %14 = vector.load %arg6[%c0_13, %c0_14] : memref<8x128xf32, #tpu.memory_space<vmem>>, vector<8x128xf32>
      tpu.vector_store %arg6[%c0_13, %c0_14], %13 {strides = array<i32>} : memref<8x128xf32, #tpu.memory_space<vmem>>, vector<8x128xf32>,
    } else {
    }
    %c0 = arith.constant 0 : index
    %c0_1 = arith.constant 0 : index
    %c0_2 = arith.constant 0 : index
    %3 = vector.load %arg2[%c0, %c0_1, %c0_2] : memref<8x4x256xf32, #tpu.memory_space<vmem>>, vector<8x4x256xf32>
    %cst = arith.constant dense<0.000000e+00> : vector<8x4xf32>
    %4 = vector.multi_reduction <add>, %3, %cst [2] : vector<8x4x256xf32> to vector<8x4xf32>
    %c0_3 = arith.constant 0 : index
    %c0_4 = arith.constant 0 : index
    %5 = vector.load %arg6[%c0_3, %c0_4] : memref<8x128xf32, #tpu.memory_space<vmem>>, vector<8x128xf32>
    %c0_5 = arith.constant 0 : index
    %c0_6 = arith.constant 0 : index
    %6 = vector.load %arg3[%c0_5, %c0_6] : memref<4x128xf32, #tpu.memory_space<vmem>>, vector<4x128xf32>
    %cst_7 = arith.constant dense<0.000000e+00> : vector<8x128xf32>
    %7 = tpu.matmul %4, %6, %cst_7 {dimension_numbers = #tpu.dot_dimension_numbers<[1], [0], [0], [1], [0, 0, 1, 1], [], []>} : vector<8x4xf32>, vector<4x128xf32>, vector<8x128xf32> -> vector<8x128xf32>
    %8 = arith.addf %5, %7 : vector<8x128xf32>
    %c0_8 = arith.constant 0 : index
    %c0_9 = arith.constant 0 : index
    %9 = vector.load %arg6[%c0_8, %c0_9] : memref<8x128xf32, #tpu.memory_space<vmem>>, vector<8x128xf32>
    tpu.vector_store %arg6[%c0_8, %c0_9], %8 {strides = array<i32>} : memref<8x128xf32, #tpu.memory_space<vmem>>, vector<8x128xf32>,
    %c0_i32_10 = arith.constant 0 : i32
    %10 = arith.cmpi eq, %arg1, %c0_i32_10 : i32
    %11 = arith.extui %10 : i1 to i32
    %c0_i32_11 = arith.constant 0 : i32
    %12 = arith.cmpi ne, %11, %c0_i32_11 : i32
    scf.if %12 {
      %c0_12 = arith.constant 0 : index
      %c0_13 = arith.constant 0 : index
      %13 = vector.load %arg6[%c0_12, %c0_13] : memref<8x128xf32, #tpu.memory_space<vmem>>, vector<8x128xf32>
      %c0_14 = arith.constant 0 : index
      %c0_15 = arith.constant 0 : index
      %14 = vector.load %arg4[%c0_14, %c0_15] : memref<1x128xf32, #tpu.memory_space<vmem>>, vector<1x128xf32>
      %15 = vector.broadcast %14 : vector<1x128xf32> to vector<8x128xf32>
      %16 = arith.addf %13, %15 : vector<8x128xf32>
      %c0_16 = arith.constant 0 : index
      %c0_17 = arith.constant 0 : index
      %17 = vector.load %arg5[%c0_16, %c0_17] : memref<8x128xf32, #tpu.memory_space<vmem>>, vector<8x128xf32>
      tpu.vector_store %arg5[%c0_16, %c0_17], %16 {strides = array<i32>} : memref<8x128xf32, #tpu.memory_space<vmem>>, vector<8x128xf32>,
    } else {
    }
    return
  }
  func.func @transform_0(%arg0: i32, %arg1: i32) -> (i32, i32, i32) {
    %c0_i32 = arith.constant 0 : i32
    %c0_i32_0 = arith.constant 0 : i32
    return %arg0, %arg1, %c0_i32 : i32, i32, i32
  }
  func.func @transform_1(%arg0: i32, %arg1: i32) -> (i32, i32) {
    %c0_i32 = arith.constant 0 : i32
    %c0_i32_0 = arith.constant 0 : i32
    return %arg1, %c0_i32 : i32, i32
  }
  func.func @transform_2(%arg0: i32, %arg1: i32) -> (i32, i32) {
    %c0_i32 = arith.constant 0 : i32
    %c0_i32_0 = arith.constant 0 : i32
    %c0_i32_1 = arith.constant 0 : i32
    return %c0_i32, %c0_i32_0 : i32, i32
  }
  func.func @transform_3(%arg0: i32, %arg1: i32) -> (i32, i32) {
    %c0_i32 = arith.constant 0 : i32
    %c0_i32_0 = arith.constant 0 : i32
    return %arg0, %c0_i32 : i32, i32
  }
}

</mosaic_0001>

<bundles_post_ra>
// kernel: tpu_custom_call.1
= control target key start
LH: loop header
LB: loop body
LE: loop exit
PB: predicated region body
PF: predicated region fallthrough
CT: control target
= control target key end

     0   :  { %8 = vsyncpa [#allocation4], 0  ;;  %s431_s0 = inlined_call_operand.hbm [shape: f32[8,4,256], index: 0, kind: input, shape index: {}]   ;;  %s432_s1 = inlined_call_operand.hbm [shape: f32[4,128], index: 1, kind: input, shape index: {}]   ;;  %s433_s2 = inlined_call_operand.vmem [shape: f32[1,128], index: 2, kind: input, shape index: {}]   ;;  %s434_s3 = inlined_call_operand.hbm [shape: f32[8,128], index: 3, kind: output, shape index: {}]  }
   0x1   :  { %9 = vsyncpa [#allocation7], 0 }
   0x2   :  { %10 = vsyncpa [#allocation5], 0  ;;  %s375_s12 = smov [#allocation3]  }
   0x3   :  { %s16_s13 = sshll.u32 %s375_s12, 4  ;;  %s17_s13 = int_to_ptr.vmem [resolvable:$true] %s16_s13 }
   0x4   :  { %s317_s14 = scalar_lea.vmem %s17_s13, 1024  ;;  %p322_p1 = scmp.lt.s32.totalorder %s17_s13, %s17_s13 }
   0x5   :  { %p318_p0 = scmp.ne.s32.totalorder %s17_s13, %s317_s14  ;;  %p323_p2 = scmp.lt.s32.totalorder %s317_s14, %s317_s14 }
   0x7   :  { %p324_p3 = por %p323_p2, %p322_p1 }
   0x9   :  { %p325_p4 = pnand %p324_p3, %p318_p0 }
   0xb   :  { %328 = shalt.err (!%p325_p4)
}
   0xc   :  { %s376_s15 = smov 128   ;;  %s377_s16 = smov 8  }
   0xd   :  { %22 = dma.hbm_to_vmem [thread:$0]  %s431_s0, 1024, %s17_s13, [#allocation4], %s376_s15, %s376_s15, %s377_s16  }
   0xe   :  { %s378_s19 = smov [#allocation6]  }
   0xf   :  { %s29_s20 = sshll.u32 %s378_s19, 4  ;;  %s30_s20 = int_to_ptr.vmem [resolvable:$true] %s29_s20 }
  0x10   :  { %s337_s21 = scalar_lea.vmem %s30_s20, 64  ;;  %p342_p6 = scmp.lt.s32.totalorder %s30_s20, %s30_s20 }
  0x11   :  { %p338_p5 = scmp.ne.s32.totalorder %s30_s20, %s337_s21  ;;  %p343_p7 = scmp.lt.s32.totalorder %s337_s21, %s337_s21 }
  0x13   :  { %p344_p8 = por %p343_p7, %p342_p6 }
  0x15   :  { %p345_p9 = pnand %p344_p8, %p338_p5 }
  0x17   :  { %348 = shalt.err (!%p345_p9)
}
  0x18   :  { %32 = dma.hbm_to_vmem [thread:$0]  %s432_s1, 64, %s30_s20, [#allocation7]  }
  0x19   :  { %369 = dma.done.wait [#allocation4], 1024  }
  0x1a   :  { %370 = vsyncadd [#allocation4], 4294966272 }
  0x1b   :  { %371 = dma.done.wait [#allocation7], 64  }
  0x1c   :  { %372 = vsyncadd [#allocation7], 4294967232  ;;  %vm78_vm0 = vcmask 1043456   ;;  %v46_v0 = vld [vmem:[#allocation3] sm:$0xff]  ;;  %v48_v1 = vld [vmem:[#allocation3 + $0x10] sm:$0xff]  ;;  %v379_v40 = vmov 0.0   ;;  %v129_v42 = vlaneseq }
  0x1d   :  { %v47_v2 = vld [vmem:[#allocation3 + $0x8] sm:$0xff]  ;;  %v62_v3 = vcombine.high %v46_v0, %v46_v0  ;;  %v79_v4 = vsel %vm78_vm0, %v46_v0, 0.0  ;;  %v64_v5 = vcombine.high %v48_v1, %v48_v1  ;;  %v89_v6 = vsel %vm78_vm0, %v48_v1, 0.0  ;;  %v49_v7 = vld [vmem:[#allocation3 + $0x18] sm:$0xff]  ;;  %v50_v8 = vld [vmem:[#allocation3 + $0x20] sm:$0xff]  ;;  %289 = vmatprep.subr.mxu0 %v379_v40  ;;  %s381_s24 = smov [#allocation8]  }
  0x1e   :  { %v63_v9 = vcombine.high %v47_v2, %v47_v2  ;;  %v84_v10 = vsel %vm78_vm0, %v47_v2, 0.0  ;;  %v65_v11 = vcombine.high %v49_v7, %v49_v7  ;;  %v51_v12 = vld [vmem:[#allocation3 + $0x28] sm:$0xff]  ;;  %v94_v15 = vsel %vm78_vm0, %v49_v7, 0.0  ;;  %v52_v21 = vld [vmem:[#allocation3 + $0x30] sm:$0xff]  ;;  %v53_v22 = vld [vmem:[#allocation3 + $0x38] sm:$0xff]  ;;  %s274_s25 = sshll.u32 %s381_s24, 4  ;;  %s275_s25 = int_to_ptr.vmem [resolvable:$true] %s274_s25 }
  0x1f   :  { %v80_v13 = vsel %vm78_vm0, %v62_v3, 0.0  ;;  %v90_v14 = vsel %vm78_vm0, %v64_v5, 0.0  ;;  %v66_v16 = vcombine.high %v50_v8, %v50_v8  ;;  %v67_v23 = vcombine.high %v51_v12, %v51_v12  ;;  %v120_v41 = vld [vmem:[#allocation6] sm:$0xf]  ;;  %s349_s26 = scalar_lea.vmem %s275_s25, 128  ;;  %p354_p11 = scmp.lt.s32.totalorder %s275_s25, %s275_s25 }
  0x20   :  { %v81_v17 = vadd.f32 %v80_v13, %v79_v4  ;;  %v91_v18 = vadd.f32 %v90_v14, %v89_v6  ;;  %v85_v19 = vsel %vm78_vm0, %v63_v9, 0.0  ;;  %v95_v20 = vsel %vm78_vm0, %v65_v11, 0.0  ;;  %290 = vmatpush3.msk.msra.mxu0 %vm78_vm0, %v120_v41  ;;  %v286_v5 = vld [vmem:[%s433_s2] ss:$0 sm:$0xff]  ;;  %p350_p10 = scmp.ne.s32.totalorder %s275_s25, %s349_s26  ;;  %p355_p12 = scmp.lt.s32.totalorder %s349_s26, %s349_s26 }
  0x21   :  { %v86_v24 = vadd.f32 %v85_v19, %v84_v10  ;;  %v96_v25 = vadd.f32 %v95_v20, %v94_v15  ;;  %v99_v26 = vsel %vm78_vm0, %v50_v8, 0.0  ;;  %v100_v27 = vsel %vm78_vm0, %v66_v16, 0.0 }
  0x22   :  { %82 = vadd.xlane.f32.xlu0 %v81_v17  ;;  %92 = vadd.xlane.f32.xlu1 %v91_v18  ;;  %v104_v28 = vsel %vm78_vm0, %v51_v12, 0.0  ;;  %v105_v29 = vsel %vm78_vm0, %v67_v23, 0.0  ;;  %v68_v30 = vcombine.high %v52_v21, %v52_v21  ;;  %v69_v31 = vcombine.high %v53_v22, %v53_v22  ;;  %p356_p13 = por %p355_p12, %p354_p11 }
  0x23   :  { %v101_v32 = vadd.f32 %v100_v27, %v99_v26  ;;  %v106_v33 = vadd.f32 %v105_v29, %v104_v28  ;;  %v109_v34 = vsel %vm78_vm0, %v52_v21, 0.0  ;;  %v114_v36 = vsel %vm78_vm0, %v53_v22, 0.0 }
  0x24   :  { %v110_v35 = vsel %vm78_vm0, %v68_v30, 0.0  ;;  %v115_v37 = vsel %vm78_vm0, %v69_v31, 0.0  ;;  %vm380_vm1 = vmmov 0   ;;  %v130_v43 = vand.u32 127, %v129_v42  ;;  %p357_p0 = pnand %p356_p13, %p350_p10 }
  0x25   :  { %v111_v38 = vadd.f32 %v110_v35, %v109_v34  ;;  %v116_v39 = vadd.f32 %v115_v37, %v114_v36  ;;  %291 = vmatprep.mubr.msk.f32.mxu0 %vm380_vm1, %v379_v40  ;;  %v132_v44 = vshrl.u32 %v129_v42, 7  ;;  %vm163_vm2 = vcmask 1041409  }
  0x26   :  { %87 = vadd.xlane.f32.xlu0 %v86_v24  ;;  %97 = vadd.xlane.f32.xlu1 %v96_v25  ;;  %vm165_vm3 = vcmask 1042434   ;;  %vm167_vm4 = vcmask 1043459   ;;  %vm169_vm5 = vcmask 1044484   ;;  %vm171_vm6 = vcmask 1045509  }
  0x27   :  { %v133_v47 = vsub.s32 %v130_v43, %v132_v44  ;;  %vm173_vm7 = vcmask 1046534   ;;  %vm175_vm8 = vcmask 1047559   ;;  %vm177_vm9 = vcmask 31744  }
  0x2a   :  { %102 = vadd.xlane.f32.xlu0 %v101_v32  ;;  %107 = vadd.xlane.f32.xlu1 %v106_v33 }
  0x2e   :  { %112 = vadd.xlane.f32.xlu0 %v111_v38  ;;  %117 = vadd.xlane.f32.xlu1 %v116_v39 }
  0xab   :  { %v83_v45 = vpop.xlane.xlu0 %82  ;;  %v93_v46 = vpop.xlane.xlu1 %92 }
  0xac   :  { %v134_v50 = vrot.slane %v83_v45, %v133_v47  ;;  %v142_v53 = vrot.slane %v93_v46, %v133_v47 }
  0xaf   :  { %v88_v48 = vpop.xlane.xlu0 %87  ;;  %v98_v49 = vpop.xlane.xlu1 %97 }
  0xb0   :  { %v138_v51 = vrot.slane %v88_v48, %v133_v47  ;;  %v146_v52 = vrot.slane %v98_v49, %v133_v47 }
  0xb2   :  { %v164_v54 = vsel %vm163_vm2, %v138_v51, %v134_v50 }
  0xb3   :  { %v166_v55 = vsel %vm165_vm3, %v142_v53, %v164_v54  ;;  %v103_v56 = vpop.xlane.xlu0 %102  ;;  %v108_v57 = vpop.xlane.xlu1 %107 }
  0xb4   :  { %v168_v58 = vsel %vm167_vm4, %v146_v52, %v166_v55  ;;  %v150_v59 = vrot.slane %v103_v56, %v133_v47  ;;  %v154_v60 = vrot.slane %v108_v57, %v133_v47 }
  0xb6   :  { %v170_v61 = vsel %vm169_vm5, %v150_v59, %v168_v58 }
  0xb7   :  { %v113_v62 = vpop.xlane.xlu0 %112  ;;  %v118_v63 = vpop.xlane.xlu1 %117  ;;  %v172_v2 = vsel %vm171_vm6, %v154_v60, %v170_v61 }
  0xb8   :  { %v158_v0 = vrot.slane %v113_v62, %v133_v47  ;;  %v162_v1 = vrot.slane %v118_v63, %v133_v47 }
  0xba   :  { %v174_v3 = vsel %vm173_vm7, %v158_v0, %v172_v2 }
  0xbb   :  { %v176_v4 = vsel %vm175_vm8, %v162_v1, %v174_v3 }
  0xbc   :  { %292 = vmatmul.mubr.msk.f32.vlgmr.msra.gmra.mxu0 %vm177_vm9, %v176_v4 }
 0x17c   :  { %v249_v6 = vpop.f32.mrf.mxu0 }
 0x17d   :  { %v266_v7 = vadd.f32 %v286_v5, %v249_v6 }
 0x17e   :  { %v293_v8 = vpop.f32.mrf.mxu0 }
 0x17f   :  { %267 = vst [vmem:[#allocation8] sm:$0xff] %v266_v7 }
 0x180   :  { %360 = shalt.err (!%p357_p0)
}
 0x181   :  { %277 = dma.vmem_to_hbm [thread:$0]  %s275_s25, 128, %s434_s3, [#allocation5]  }
 0x182   :  { %373 = dma.done.wait [#allocation5], 128  }
 0x183   :  { %374 = vsyncadd [#allocation5], 4294967168 }
 0x184   :  { %281 = vsyncpa [#allocation4], 1 }
 0x185   :  { %282 = vsyncpa [#allocation7], 1 }
 0x186   :  { %283 = vsyncpa [#allocation5], 1 }

</bundles_post_ra>
